<compile_context>
chip_gen: v7x
topology: tpu7x:2x2x1
jax: 0.10.0
libtpu: 0.0.40
codegen_flags: <defaults>
</compile_context>

<pallas_src>
import functools

import jax
import jax.numpy as jnp
from jax.experimental import pallas as pl
from jax.experimental.pallas import tpu as pltpu


def bert_output_kernel(x_ref, res_ref, w_ref, b_ref, gamma_ref, beta_ref,
                       o_ref, *, eps):
    # x_ref:     (TM, K)   intermediate activations tile (native dtype)
    # res_ref:   (TM, N)   residual (attention output) tile
    # w_ref:     (K,  N)   dense weight, already in [K, N] layout (native dtype)
    # b_ref:     (1,  N)   dense bias
    # gamma_ref: (1,  N)   LayerNorm weight
    # beta_ref:  (1,  N)   LayerNorm bias
    # o_ref:     (TM, N)   output tile

    # Dense: MXU matmul in the operands' native dtype, f32 accumulation.
    h = jnp.dot(x_ref[...], w_ref[...], preferred_element_type=jnp.float32)
    h = h + b_ref[...].astype(jnp.float32)

    # Dropout is identity in eval mode.

    # Residual add in f32.
    h = h + res_ref[...].astype(jnp.float32)

    # LayerNorm over the hidden dim (biased variance, eps inside rsqrt -> matches torch).
    n = h.shape[-1]
    inv_n = 1.0 / n
    mean = jnp.sum(h, axis=-1, keepdims=True) * inv_n
    centered = h - mean
    var = jnp.sum(centered * centered, axis=-1, keepdims=True) * inv_n
    inv = jax.lax.rsqrt(var + eps)
    y = (centered * inv) * gamma_ref[...].astype(jnp.float32) \
        + beta_ref[...].astype(jnp.float32)

    o_ref[...] = y.astype(o_ref.dtype)


def prepare_dense_weight(w, act_dtype=None):
    """Hoist the transpose out of the per-call path.

    w: [N, K] PyTorch Linear layout (out_features x in_features).
    Returns w_t: [K, N], optionally cast to the activation dtype (e.g. bf16) so the
    matmul takes the fast MXU path. Call once at parameter-load time, not per forward.
    """
    w_t = jnp.asarray(w).T
    if act_dtype is not None:
        w_t = w_t.astype(act_dtype)
    return w_t


def _pick_tile_m(M, target):
    """Largest power-of-two-ish tile <= target that divides M; prefer >= 2 grid steps."""
    best = None
    for t in (1024, 512, 256, 128, 64, 32, 16, 8):
        if t <= target and t <= M and M % t == 0:
            best = t
            break
    if best is None:
        best = M  # block equals full array extent; always legal
    # Keep at least 2 grid steps when possible so both v7x TensorCores get work.
    if M // best < 2 and best % 2 == 0 and (best // 2) % 8 == 0:
        best //= 2
    return best


def bert_output_forward(hidden_states, input_tensor, w_t, b, gamma, beta,
                        *, eps=1e-12, tile_m=256):
    """hidden_states: [B, S, K] (intermediate), input_tensor: [B, S, N] (hidden).

    w_t: [K, N] (already transposed via prepare_dense_weight)
    b, gamma, beta: [N]
    Returns [B, S, N].
    """
    B, S, K = hidden_states.shape
    N = input_tensor.shape[-1]
    assert w_t.shape == (K, N), f"expected w_t [K,N]=({K},{N}), got {w_t.shape}"
    M = B * S

    tm = _pick_tile_m(M, tile_m)
    grid = (M // tm,)

    x2d = hidden_states.reshape(M, K)
    r2d = input_tensor.reshape(M, N)
    b2d = b.reshape(1, N)
    g2d = gamma.reshape(1, N)
    be2d = beta.reshape(1, N)

    # VMEM budget: double-buffered x/res/out tiles + (double-buffered) resident weight
    # + params, with headroom. Capped at 64 MiB so the request is valid on v7x as well.
    est = (2 * tm * K * x2d.dtype.itemsize
           + 2 * tm * N * r2d.dtype.itemsize
           + 2 * tm * N * x2d.dtype.itemsize
           + 2 * K * N * w_t.dtype.itemsize
           + 2 * 3 * N * 4
           + (4 << 20))
    vmem_limit = int(min(max(est, 32 << 20), 64 << 20))

    cost = pl.CostEstimate(
        flops=2 * M * K * N + 8 * M * N,
        transcendentals=M,  # one rsqrt per row
        bytes_accessed=(M * K * x2d.dtype.itemsize
                        + M * N * r2d.dtype.itemsize
                        + K * N * w_t.dtype.itemsize
                        + M * N * x2d.dtype.itemsize
                        + 3 * N * 4),
    )

    out = pl.pallas_call(
        functools.partial(bert_output_kernel, eps=eps),
        out_shape=jax.ShapeDtypeStruct((M, N), hidden_states.dtype),
        grid_spec=pltpu.PrefetchScalarGridSpec(
            num_scalar_prefetch=0,
            grid=grid,
            in_specs=[
                pl.BlockSpec((tm, K), lambda i: (i, 0)),   # x tile
                pl.BlockSpec((tm, N), lambda i: (i, 0)),   # residual tile
                pl.BlockSpec((K, N),  lambda i: (0, 0)),   # weight (resident, grid-invariant)
                pl.BlockSpec((1, N),  lambda i: (0, 0)),   # bias
                pl.BlockSpec((1, N),  lambda i: (0, 0)),   # gamma
                pl.BlockSpec((1, N),  lambda i: (0, 0)),   # beta
            ],
            out_specs=pl.BlockSpec((tm, N), lambda i: (i, 0)),
        ),
        compiler_params=pltpu.CompilerParams(
            dimension_semantics=("parallel",),
            vmem_limit_bytes=vmem_limit,
        ),
        cost_estimate=cost,
    )(x2d, r2d, w_t, b2d, g2d, be2d)

    return out.reshape(B, S, N)


def reference_forward(hidden_states, input_tensor, w, b, gamma, beta, eps=1e-12):
    h = jnp.einsum("bsk,nk->bsn", hidden_states, w) + b
    h = h + input_tensor
    mean = jnp.mean(h, axis=-1, keepdims=True)
    var = jnp.mean((h - mean) ** 2, axis=-1, keepdims=True)
    return (h - mean) * jax.lax.rsqrt(var + eps) * gamma + beta


if __name__ == "__main__":
    # Small config: batch=2, seq=8, hidden=32, intermediate=64
    B, S, HID, INTER = 2, 8, 32, 64
    eps = 1e-12

    key = jax.random.PRNGKey(0)
    k1, k2, k3, k4 = jax.random.split(key, 4)

    hidden_states = jax.random.normal(k1, (B, S, INTER), dtype=jnp.float32)
    input_tensor = jax.random.normal(k2, (B, S, HID), dtype=jnp.float32)

    # Deterministic parameter init (Linear: [out, in] like PyTorch)
    w = jax.random.normal(k3, (HID, INTER), dtype=jnp.float32) * 0.02
    b = jax.random.normal(k4, (HID,), dtype=jnp.float32) * 0.01
    gamma = jnp.ones((HID,), dtype=jnp.float32)
    beta = jnp.zeros((HID,), dtype=jnp.float32)

    # One-time weight prep (transpose hoisted out of the per-call path).
    w_t = prepare_dense_weight(w, act_dtype=hidden_states.dtype)

    out = bert_output_forward(hidden_states, input_tensor, w_t, b, gamma, beta,
                              eps=eps, tile_m=256)
    out = jax.block_until_ready(out)

    ref = reference_forward(hidden_states, input_tensor, w, b, gamma, beta, eps)
    assert out.shape == (B, S, HID)
    assert jnp.allclose(out, ref, atol=1e-4, rtol=1e-4), "mismatch vs reference"

    print("KERNEL_OK")
</pallas_src>

<mosaic_0001>
module attributes {stable_mosaic.version = 11 : i64} {
  func.func @bert_output_kernel(%arg0: i32, %arg1: memref<8x64xf32, #tpu.memory_space<vmem>>, %arg2: memref<8x32xf32, #tpu.memory_space<vmem>>, %arg3: memref<64x32xf32, #tpu.memory_space<vmem>>, %arg4: memref<1x32xf32, #tpu.memory_space<vmem>>, %arg5: memref<1x32xf32, #tpu.memory_space<vmem>>, %arg6: memref<1x32xf32, #tpu.memory_space<vmem>>, %arg7: memref<8x32xf32, #tpu.memory_space<vmem>>) attributes {dimension_semantics = [#tpu.dimension_semantics<parallel>], iteration_bounds = array<i64: 2>, scalar_prefetch = 0 : i64, scratch_operands = 0 : i64, tpu.core_type = #tpu.core_type<tc>, window_params = [{transform_indices = @transform_0, window_bounds = array<i64: 8, 64>}, {transform_indices = @transform_1, window_bounds = array<i64: 8, 32>}, {pipeline_mode = #tpu.pipeline_mode<synchronous>, transform_indices = @transform_2, window_bounds = array<i64: 64, 32>}, {pipeline_mode = #tpu.pipeline_mode<synchronous>, transform_indices = @transform_3, window_bounds = array<i64: 1, 32>}, {pipeline_mode = #tpu.pipeline_mode<synchronous>, transform_indices = @transform_4, window_bounds = array<i64: 1, 32>}, {pipeline_mode = #tpu.pipeline_mode<synchronous>, transform_indices = @transform_5, window_bounds = array<i64: 1, 32>}, {transform_indices = @transform_6, window_bounds = array<i64: 8, 32>}]} {
    %c0 = arith.constant 0 : index
    %c0_0 = arith.constant 0 : index
    %0 = vector.load %arg1[%c0, %c0_0] : memref<8x64xf32, #tpu.memory_space<vmem>>, vector<8x64xf32>
    %c0_1 = arith.constant 0 : index
    %c0_2 = arith.constant 0 : index
    %1 = vector.load %arg3[%c0_1, %c0_2] : memref<64x32xf32, #tpu.memory_space<vmem>>, vector<64x32xf32>
    %cst = arith.constant dense<0.000000e+00> : vector<8x32xf32>
    %2 = tpu.matmul %0, %1, %cst {dimension_numbers = #tpu.dot_dimension_numbers<[1], [0], [0], [1], [0, 0, 1, 1], [], []>} : vector<8x64xf32>, vector<64x32xf32>, vector<8x32xf32> -> vector<8x32xf32>
    %c0_3 = arith.constant 0 : index
    %c0_4 = arith.constant 0 : index
    %3 = vector.load %arg4[%c0_3, %c0_4] : memref<1x32xf32, #tpu.memory_space<vmem>>, vector<1x32xf32>
    %4 = vector.broadcast %3 : vector<1x32xf32> to vector<8x32xf32>
    %5 = arith.addf %2, %4 : vector<8x32xf32>
    %c0_5 = arith.constant 0 : index
    %c0_6 = arith.constant 0 : index
    %6 = vector.load %arg2[%c0_5, %c0_6] : memref<8x32xf32, #tpu.memory_space<vmem>>, vector<8x32xf32>
    %7 = arith.addf %5, %6 : vector<8x32xf32>
    %cst_7 = arith.constant dense<0.000000e+00> : vector<8xf32>
    %8 = vector.multi_reduction <add>, %7, %cst_7 [1] : vector<8x32xf32> to vector<8xf32>
    %9 = vector.shape_cast %8 : vector<8xf32> to vector<8x1xf32>
    %cst_8 = arith.constant 3.125000e-02 : f32
    %10 = vector.broadcast %cst_8 : f32 to vector<8x1xf32>
    %11 = arith.mulf %9, %10 : vector<8x1xf32>
    %12 = vector.broadcast %11 : vector<8x1xf32> to vector<8x32xf32>
    %13 = arith.subf %7, %12 : vector<8x32xf32>
    %14 = arith.mulf %13, %13 : vector<8x32xf32>
    %cst_9 = arith.constant dense<0.000000e+00> : vector<8xf32>
    %15 = vector.multi_reduction <add>, %14, %cst_9 [1] : vector<8x32xf32> to vector<8xf32>
    %16 = vector.shape_cast %15 : vector<8xf32> to vector<8x1xf32>
    %cst_10 = arith.constant 3.125000e-02 : f32
    %17 = vector.broadcast %cst_10 : f32 to vector<8x1xf32>
    %18 = arith.mulf %16, %17 : vector<8x1xf32>
    %cst_11 = arith.constant 9.99999996E-13 : f32
    %19 = vector.broadcast %cst_11 : f32 to vector<8x1xf32>
    %20 = arith.addf %18, %19 : vector<8x1xf32>
    %21 = math.rsqrt %20 : vector<8x1xf32>
    %22 = vector.broadcast %21 : vector<8x1xf32> to vector<8x32xf32>
    %23 = arith.mulf %13, %22 : vector<8x32xf32>
    %c0_12 = arith.constant 0 : index
    %c0_13 = arith.constant 0 : index
    %24 = vector.load %arg5[%c0_12, %c0_13] : memref<1x32xf32, #tpu.memory_space<vmem>>, vector<1x32xf32>
    %25 = vector.broadcast %24 : vector<1x32xf32> to vector<8x32xf32>
    %26 = arith.mulf %23, %25 : vector<8x32xf32>
    %c0_14 = arith.constant 0 : index
    %c0_15 = arith.constant 0 : index
    %27 = vector.load %arg6[%c0_14, %c0_15] : memref<1x32xf32, #tpu.memory_space<vmem>>, vector<1x32xf32>
    %28 = vector.broadcast %27 : vector<1x32xf32> to vector<8x32xf32>
    %29 = arith.addf %26, %28 : vector<8x32xf32>
    %c0_16 = arith.constant 0 : index
    %c0_17 = arith.constant 0 : index
    %30 = vector.load %arg7[%c0_16, %c0_17] : memref<8x32xf32, #tpu.memory_space<vmem>>, vector<8x32xf32>
    tpu.vector_store %arg7[%c0_16, %c0_17], %29 {strides = array<i32>} : memref<8x32xf32, #tpu.memory_space<vmem>>, vector<8x32xf32>,
    return
  }
  func.func @transform_0(%arg0: i32) -> (i32, i32) {
    %c0_i32 = arith.constant 0 : i32
    %c0_i32_0 = arith.constant 0 : i32
    return %arg0, %c0_i32 : i32, i32
  }
  func.func @transform_1(%arg0: i32) -> (i32, i32) {
    %c0_i32 = arith.constant 0 : i32
    %c0_i32_0 = arith.constant 0 : i32
    return %arg0, %c0_i32 : i32, i32
  }
  func.func @transform_2(%arg0: i32) -> (i32, i32) {
    %c0_i32 = arith.constant 0 : i32
    %c0_i32_0 = arith.constant 0 : i32
    %c0_i32_1 = arith.constant 0 : i32
    return %c0_i32, %c0_i32_0 : i32, i32
  }
  func.func @transform_3(%arg0: i32) -> (i32, i32) {
    %c0_i32 = arith.constant 0 : i32
    %c0_i32_0 = arith.constant 0 : i32
    %c0_i32_1 = arith.constant 0 : i32
    return %c0_i32, %c0_i32_0 : i32, i32
  }
  func.func @transform_4(%arg0: i32) -> (i32, i32) {
    %c0_i32 = arith.constant 0 : i32
    %c0_i32_0 = arith.constant 0 : i32
    %c0_i32_1 = arith.constant 0 : i32
    return %c0_i32, %c0_i32_0 : i32, i32
  }
  func.func @transform_5(%arg0: i32) -> (i32, i32) {
    %c0_i32 = arith.constant 0 : i32
    %c0_i32_0 = arith.constant 0 : i32
    %c0_i32_1 = arith.constant 0 : i32
    return %c0_i32, %c0_i32_0 : i32, i32
  }
  func.func @transform_6(%arg0: i32) -> (i32, i32) {
    %c0_i32 = arith.constant 0 : i32
    %c0_i32_0 = arith.constant 0 : i32
    return %arg0, %c0_i32 : i32, i32
  }
}

</mosaic_0001>

<bundles_post_ra>
// kernel: tpu_custom_call.1
= control target key start
LH: loop header
LB: loop body
LE: loop exit
PB: predicated region body
PF: predicated region fallthrough
CT: control target
= control target key end

     0   :  { %11 = vsyncpa [#allocation3], 0  ;;  %s813_s0 = inlined_call_operand.vmem [shape: f32[16,64], index: 0, kind: input, shape index: {}]   ;;  %s814_s1 = inlined_call_operand.vmem [shape: f32[16,32], index: 1, kind: input, shape index: {}]   ;;  %s815_s2 = inlined_call_operand.vmem [shape: f32[64,32], index: 2, kind: input, shape index: {}]   ;;  %s816_s3 = inlined_call_operand.vmem [shape: f32[1,32], index: 3, kind: input, shape index: {}]   ;;  %s817_s4 = inlined_call_operand.vmem [shape: f32[1,32], index: 4, kind: input, shape index: {}]   ;;  %s818_s5 = inlined_call_operand.vmem [shape: f32[1,32], index: 5, kind: input, shape index: {}]   ;;  %s819_s6 = inlined_call_operand.hbm [shape: f32[16,32], index: 6, kind: output, shape index: {}]  }
   0x1   :  { %13 = vsyncpa [#allocation3 + $0x1], 0  ;;  %s674_s21 = smov 0   ;;  %s676_s22 = smov 0  }
   0x2   :  { %s678_s23 = smov 0   ;;  %s680_s24 = smov 0  }
   0x3 LB: > { %s695_s25 = sadd.s32 4294967295, %s633_s24   ;;  %s472_s26 = sadd.s32 4294967294, %s633_s24   ;;  %s633_s24 = sphi %s680_s24, %s825_s24   ;;  %s629_s23 = sphi %s678_s23, %s824_s23   ;;  %s625_s22 = sphi %s676_s22, %s823_s22   ;;  %s621_s21 = sphi %s674_s21, %s822_s21  }
   0x4   : > { %s699_s27 = sadd.s32 1, %s633_s24   ;;  %s162_s28 = sadd.s32 1, %s629_s23 }
   0x5   : > { %s159_s29 = ssub.s32 %s633_s24, %s699_s27  ;;  %p172_p0 = scmp.ne.s32.totalorder %s629_s23, %s625_s22 }
   0x6   : > { %p160_p1 = scmp.eq.s32.totalorder %s159_s29, 0  ;;  %p173_p2 = scmp.eq.s32.totalorder %s695_s25, 1 }
   0x7   : > { %p178_p3 = scmp.ne.s32.totalorder %s625_s22, %s621_s21  ;;  %p179_p4 = scmp.eq.s32.totalorder %s472_s26, 1 }
   0x8   : > { %s710_s30 = scalar_select %p160_p1, %s629_s23, %s162_s28  }
   0x9   : > { %p712_p5 = por %p173_p2, %p172_p0  ;;  %p716_p6 = por %p179_p4, %p178_p3 }
   0xa   : > { %p475_p7 = scmp.ge.s32.totalorder %s633_s24, 1  ;;  %p223_p8 = scmp.lt.s32.totalorder %s633_s24, 3 }
   0xc   : > { %p224_p9 = pnand %p475_p7, %p223_p8 }
   0xd   : > { %v265_v0 = vld [vmem:[%s815_s2] sm:$0xff] (!%p224_p9)  ;;  %v266_v1 = vld [vmem:[%s815_s2 + $0x8] sm:$0xff] (!%p224_p9)  ;;  %v267_v2 = vld [vmem:[%s815_s2 + $0x10] sm:$0xff] (!%p224_p9)  ;;  %v635_v3 = vmov (!%p224_p9), 0.0|0.0   ;;  %vm636_vm0 = vmmov (!%p224_p9), 0   ;;  %v637_v6 = vmov (!%p224_p9), 0.0  }
   0xe   : > { %227 = sbr.rel (%p224_p9) target bundleno = 574 (0x23e), region = 44  ;;  %515 = vmatprep.subr.bf16.mxu0 (!%p224_p9), %v635_v3  ;;  %v516_v4 = vpack.c.bf16 (!%p224_p9), %v266_v1, %v265_v0  ;;  %v268_v5 = vld [vmem:[%s815_s2 + $0x18] sm:$0xff] (!%p224_p9)  ;;  %512 = vmatprep.mubr.msk.f32.mxu0 (!%p224_p9), %vm636_vm0, %v637_v6  ;;  %p256_p10 = scmp.lt.s32.totalorder (!%p224_p9), %s695_s25, 1  ;;  %v269_v8 = vld [vmem:[%s815_s2 + $0x20] sm:$0xff] (!%p224_p9)  ;;  %v270_v9 = vld [vmem:[%s815_s2 + $0x28] sm:$0xff] (!%p224_p9)  ;;  %vm280_vm1 = vcmask (!%p224_p9), 523264  }
   0xf   : > { %v519_v7 = vpack.c.bf16 (!%p224_p9), %v268_v5, %v267_v2  ;;  %v522_v10 = vpack.c.bf16 (!%p224_p9), %v270_v9, %v269_v8  ;;  %v271_v11 = vld [vmem:[%s815_s2 + $0x30] sm:$0xff] (!%p224_p9)  ;;  %v272_v12 = vld [vmem:[%s815_s2 + $0x38] sm:$0xff] (!%p224_p9)  ;;  %v479_v15 = vld [vmem:[%s816_s3] ss:$0 sm:$0xff] (!%p224_p9)  ;;  %vm356_vm2 = vcmask (!%p224_p9), 261120   ;;  %s253_s20 = sand.u32 (!%p224_p9), 1, %s625_s22  }
  0x10   : > { %517 = vmatpush3.bf16.msra.mxu0 (!%p224_p9), %v516_v4  ;;  %v525_v13 = vpack.c.bf16 (!%p224_p9), %v272_v12, %v271_v11  ;;  %v481_v31 = vld [vmem:[%s817_s4] ss:$0 sm:$0xff] (!%p224_p9) }
  0x11   : > { %518 = vmatprep.subr.bf16.mxu0 (!%p224_p9), %v635_v3  ;;  %v482_v33 = vld [vmem:[%s818_s5] ss:$0 sm:$0xff] (!%p224_p9) }
  0x14   : > { %520 = vmatpush3.bf16.msra.mxu0 (!%p224_p9), %v519_v7 }
  0x15   : > { %s257_s26 = scalar_select %p256_p10, %s695_s25, 1  ;;  %521 = vmatprep.subr.bf16.mxu0 %v635_v3 }
  0x17   : > { %s477_s11 = sshll.u32 %s257_s26, 3  ;;  %s476_s26 = sshll.u32 %s253_s20, 3 }
  0x18   : > { %523 = vmatpush3.bf16.msra.mxu0 %v522_v10  ;;  %s259_s14 = scalar_lea.vmem %s813_s0, %s477_s11  ;;  %s263_s17 = scalar_lea.vmem %s814_s1, %s477_s11 }
  0x19   : > { %524 = vmatprep.subr.bf16.mxu0 %v635_v3  ;;  %v264_v14 = vld [vmem:[%s259_s14] sm:$0xff]  ;;  %s484_s11 = sshll.u32 %s695_s25, 7  ;;  %s255_s12 = scalar_lea.vmem [#allocation2], %s476_s26 }
  0x1a   : > { %v354_v17 = vld [vmem:[%s263_s17] sm:$0xff]  ;;  %s401_s13 = sshll.u32 %s255_s12, 4  ;;  %s770_s16 = scalar_lea.hbm %s819_s6, %s484_s11  ;;  %s772_s13 = int_to_ptr.vmem [resolvable:$true] %s401_s13 }
  0x1b   : > { %s388_s17 = scalar_lea.sflag [#allocation3], %s253_s20  ;;  %s571_s18 = scalar_lea.vmem %s772_s13, 128 }
  0x1c   : > { %526 = vmatpush3.bf16.msra.mxu0 %v525_v13  ;;  %p572_p11 = scmp.ne.s32.totalorder %s772_s13, %s571_s18  ;;  %s638_s25 = smov [#allocation2]  }
  0x1d   : > { %s575_s19 = sshll.u32 %s638_s25, 4  ;;  %s576_s19 = int_to_ptr.vmem [resolvable:$false] %s575_s19 }
  0x1e   : > { %p573_p12 = pnand %p572_p11, %p712_p5  ;;  %s577_s26 = scalar_lea.vmem %s576_s19, 256 }
  0x1f   : > { %513 = vmatmul.mubr.msk.f32.vlgmr.msra.gmra.mrb[0].mxu0 %vm280_vm1, %v264_v14  ;;  %p578_p0 = scmp.lt.s32.totalorder %s772_s13, %s576_s19  ;;  %p579_p1 = scmp.lt.s32.totalorder %s577_s26, %s571_s18 }
  0x20   : > { %p574_p13 = pneg %p573_p12 }
  0x21   : > { %p580_p2 = por %p579_p1, %p578_p0 }
  0x23   : > { %p581_p3 = pnand %p580_p2, %p574_p13 }
  0xf2   : > { %v350_v16 = vpop.f32.mrb[0].mxu0 }
  0xf3   : > { %v351_v18 = vadd.f32 %v479_v15, %v350_v16  ;;  %v514_v19 = vpop.f32.mrb[1].mxu0 }
  0xf5   : > { %v355_v20 = vadd.f32 %v354_v17, %v351_v18 }
  0xf7   : > { %v357_v21 = vsel %vm356_vm2, %v355_v20, 0.0 }
  0xf8   : > { %358 = vadd.xlane.f32.xlu0 %v357_v21 }
 0x185   : > { %v359_v22 = vpop.xlane.xlu0 %358 }
 0x186   : > { %v360_v23 = vmul.f32 0.03125, %v359_v22 }
 0x188   : > { %v361_v24 = vsub.f32 %v355_v20, %v360_v23 }
 0x18a   : > { %v362_v25 = vmul.f32 %v361_v24, %v361_v24 }
 0x18c   : > { %v363_v26 = vsel %vm356_vm2, %v362_v25, 0.0 }
 0x18d   : > { %364 = vadd.xlane.f32.xlu0 %v363_v26 }
 0x21a   : > { %v365_v27 = vpop.xlane.xlu0 %364 }
 0x21b   : > { %v366_v28 = vmul.f32 0.03125, %v365_v27 }
 0x21d   : > { %v367_v29 = vadd.f32 1e-12, %v366_v28 }
 0x21f   : > { %569 = vrsqrt.f32 %v367_v29 }
 0x229   : > { %v570_v30 = vpop.eup %569 }
 0x22a   : > { %v369_v32 = vmul.f32 %v570_v30, %v361_v24 }
 0x22c   : > { %v377_v34 = vmul.f32 %v481_v31, %v369_v32 }
 0x22e   : > { %v385_v35 = vadd.f32 %v482_v33, %v377_v34 }
 0x230   : > { %386 = vst.msk [vmem:[%s255_s12] sm:$0xff] %vm356_vm2, %v385_v35 }
 0x231   : > { %584 = shalt.err (!%p581_p3)
}
 0x232   : > { %s585_s20 = scalar_lea.hbm %s770_s16, 128  ;;  %s589_s9 = scalar_lea.hbm %s819_s6, 256 }
 0x233   : > { %p586_p4 = scmp.ne.s32.totalorder %s770_s16, %s585_s20  ;;  %p590_p9 = scmp.lt.u32.totalorder %s770_s16, %s819_s6 }
 0x234   : > { %p591_p10 = scmp.lt.u32.totalorder %s589_s9, %s585_s20  ;;  %p593_p12 = scmp.lt.u32.totalorder %s585_s20, %s770_s16 }
 0x235   : > { %p587_p7 = pnand %p586_p4, %p712_p5 }
 0x236   : > { %p592_p11 = por %p591_p10, %p590_p9 }
 0x237   : > { %p588_p8 = pneg %p587_p7 }
 0x238   : > { %p594_p13 = por %p593_p12, %p592_p11 }
 0x23a   : > { %p595_p0 = pnand %p594_p13, %p588_p8 }
 0x23c   : > { %598 = shalt.err (!%p595_p0)
}
 0x23d   : > { %527 = dma.vmem_to_hbm [thread:$0]  (%p712_p5), %s772_s13, 128, %s770_s16, %s388_s17  }
 0x23e PF: > { %p533_p1 = scmp.ge.s32.totalorder %s633_s24, 2  ;;  %s413_s12 = sand.u32 1, %s621_s21  }
 0x23f   : > { %s414_s14 = scalar_lea.sflag [#allocation3], %s413_s12 }
 0x240   : > { %p530_p2 = pnand %p533_p1, %p716_p6 }
 0x242   : > { %616 = dma.done.wait (!%p530_p2), %s414_s14, 128  }
 0x243   : > { %618 = vsyncadd (!%p530_p2), %s414_s14, 4294967168  ;;  %p16_p3 = scmp.ge.s32.totalorder %s699_s27, 4   ;;  %s822_s21 = smov %s625_s22 }
 0x244   : > { %s823_s22 = smov %s629_s23  ;;  %s824_s23 = smov %s710_s30 }
 0x245   : > { %s825_s24 = smov %s699_s27  ;;  %18 = sbr.rel (!%p16_p3) target bundleno = 3 (0x3), region = 82 }
 0x24c   :  { %419 = vsyncpa [#allocation3], 1 }
 0x24d   :  { %421 = vsyncpa [#allocation3 + $0x1], 1 }

</bundles_post_ra>
